<compile_context>
chip_gen: v5e
topology: v5e:2x2
jax: 0.10.0
libtpu: 0.0.40
codegen_flags: <defaults>
</compile_context>

<pallas_src>
import jax
import jax.numpy as jnp
from jax.experimental import pallas as pl
from jax.experimental.pallas import tpu as pltpu


def _round_up(a: int, b: int) -> int:
    return ((a + b - 1) // b) * b


# -----------------------------------------------------------------------------
# Hardware detection / per-generation defaults
# -----------------------------------------------------------------------------

def _device_kind() -> str:
    try:
        return jax.devices()[0].device_kind.lower()
    except Exception:  # no accelerator visible; planner falls back to defaults
        return ""


def _vmem_capacity_bytes(kind: str) -> int:
    """Physical VMEM per TensorCore. Prefers the hardware query; falls back to
    a per-generation table. (Query-only try/except: this can never mask a
    kernel lowering / OOM error.)"""
    try:
        cap = int(pltpu.get_tpu_info().vmem_capacity_bytes)
        if cap > 0:
            return cap
    except Exception:
        pass
    for key, mib in (("v2", 16), ("v3", 16), ("v4", 128), ("v5p", 128),
                     ("v5", 128), ("v6", 128), ("v7", 64)):
        if key in kind:
            return mib * 2 ** 20
    return 64 * 2 ** 20  # unknown: conservative


def _gen_config(kind: str) -> dict:
    if "v5e" in kind or "v5 lite" in kind or "v5lite" in kind:
        # v5e: no packed-bf16 VPU/EUP -> keep GELU in f32; firmly MXU-bound,
        # so use big token tiles (128 MiB VMEM leaves ample room).
        return dict(tm=512, bf16_gelu=False, max_inner_th=None)
    if "v7" in kind:
        # v7x: 64 MiB VMEM per TC -> smaller token tile + in-kernel H chunking
        # so the (tm, 4C) f32 intermediate stays a few hundred KiB.
        # (For tiny-M decode shapes, splitting H across the 2 TCs instead of
        #  the token axis would avoid duplicated weight DMA; not done here.)
        return dict(tm=256, bf16_gelu=True, max_inner_th=1024)
    if "v6" in kind:
        # v6e: 128 MiB VMEM, bf16 VPU/EUP; tm=512 halves per-step overhead.
        return dict(tm=512, bf16_gelu=True, max_inner_th=None)
    # Unknown / other (v4, v5p, ...): conservative middle ground.
    return dict(tm=256, bf16_gelu=True, max_inner_th=1024)


def _single_buffer_supported() -> bool:
    """Explicit feature check for BlockSpec(pipeline_mode=pl.Buffered(1)).
    Only a TypeError from the unsupported kwarg is caught here; nothing from
    the actual pallas_call is ever swallowed."""
    if not hasattr(pl, "Buffered"):
        return False
    try:
        pl.BlockSpec((8, 128), lambda i: (0, 0),
                     pipeline_mode=pl.Buffered(buffer_count=1))
    except TypeError:
        return False
    return True


# -----------------------------------------------------------------------------
# Tiling plan
# -----------------------------------------------------------------------------

def _plan(M, C, H, cfg, compute_isz, x_isz, out_isz, budget_bytes,
          single_buf_ok, tm_override):
    """Choose (token tile, H block, streaming?, single-buffer-weights?)."""
    tm = cfg["tm"] if tm_override is None else tm_override
    tm = max(8, min(tm, _round_up(M, 8)))          # tm stays a multiple of 8
    max_inner = cfg["max_inner_th"]
    budget = int(budget_bytes * 0.9)               # headroom for compiler scratch

    def footprint(th, nbuf_w, streaming):
        th_i = th if max_inner is None else min(th, max_inner)
        w = 2 * C * th * compute_isz * nbuf_w      # w_fc + w_proj blocks
        b = (th + C) * 4 * nbuf_w                  # biases (tiny)
        xb = 2 * tm * C * x_isz                    # x tile, double-buffered
        ob = 2 * tm * C * out_isz                  # out tile, double-buffered
        acc = tm * C * 4 if streaming else 0       # f32 accumulator scratch
        inter = tm * th_i * (4 + compute_isz)      # mm1 f32 result + GELU out
        return w + b + xb + ob + acc + inter

    # (1) Weights fully VMEM-resident (read from HBM once for the whole call).
    if footprint(H, 2, False) <= budget:
        return tm, H, False, False
    if single_buf_ok and footprint(H, 1, False) <= budget:
        return tm, H, False, True
    # (2) Stream the hidden dim: (C, th)/(th, C) blocks over an "arbitrary"
    #     grid axis, double-buffered so the next chunk prefetches.
    cands = sorted((t for t in range(128, H, 128) if H % t == 0), reverse=True)
    for th in cands:
        if footprint(th, 2, True) <= budget:
            return tm, th, True, False
    if cands:                                      # best effort: smallest chunk
        return tm, cands[-1], True, False
    return tm, H, False, single_buf_ok             # H cannot be split


def _inner_split(th_block, max_inner_th):
    """Split an H block into equal in-kernel chunks of width <= max_inner_th
    (multiple of 128) so the (tm, th) f32 intermediate stays small."""
    if max_inner_th is None or th_block <= max_inner_th or th_block % 128:
        return 1, th_block
    n = -(-th_block // max_inner_th)
    while n <= th_block // 128:
        if th_block % n == 0 and (th_block // n) % 128 == 0:
            return n, th_block // n
        n += 1
    return 1, th_block


# -----------------------------------------------------------------------------
# Kernels
# -----------------------------------------------------------------------------

def _block_ffn(x_ref, w1_ref, b1_ref, w2_ref, num_inner, th_inner,
               compute_dtype):
    """sum_j GELU_tanh(x @ w1[:, j] + b1[:, j]) @ w2[j, :] over static
    in-kernel H chunks; returns a (tm, C) float32 partial."""
    x = x_ref[...]
    if x.dtype != compute_dtype:
        x = x.astype(compute_dtype)                # cast once, inside the kernel
    acc = None
    for j in range(num_inner):                     # small static unroll
        if num_inner == 1:
            w1c, b1c, w2c = w1_ref[...], b1_ref[...], w2_ref[...]
        else:
            sl = pl.ds(j * th_inner, th_inner)     # static start: zero-cost slice
            w1c, b1c, w2c = w1_ref[:, sl], b1_ref[:, sl], w2_ref[sl, :]
        h = jnp.dot(x, w1c, preferred_element_type=jnp.float32)   # f32 accum
        h = h.astype(b1c.dtype) + b1c              # bias + GELU in gelu_dtype
        g = jax.nn.gelu(h, approximate=True)       # == torch GELU('tanh')
        if g.dtype != w2c.dtype:
            g = g.astype(w2c.dtype)
        p = jnp.dot(g, w2c, preferred_element_type=jnp.float32)
        acc = p if acc is None else acc + p
    return acc


def _make_resident_kernel(num_inner, th_inner, compute_dtype):
    def kernel(x_ref, w1_ref, b1_ref, w2_ref, b2_ref, o_ref):
        y = _block_ffn(x_ref, w1_ref, b1_ref, w2_ref,
                       num_inner, th_inner, compute_dtype)
        o_ref[...] = (y + b2_ref[...]).astype(o_ref.dtype)
    return kernel


def _make_streaming_kernel(num_inner, th_inner, compute_dtype):
    def kernel(x_ref, w1_ref, b1_ref, w2_ref, b2_ref, o_ref, acc_ref):
        h_idx = pl.program_id(1)

        @pl.when(h_idx == 0)
        def _():
            acc_ref[...] = jnp.zeros_like(acc_ref)

        acc_ref[...] += _block_ffn(x_ref, w1_ref, b1_ref, w2_ref,
                                   num_inner, th_inner, compute_dtype)

        @pl.when(h_idx == pl.num_programs(1) - 1)
        def _():
            o_ref[...] = (acc_ref[...] + b2_ref[...]).astype(o_ref.dtype)
    return kernel


# -----------------------------------------------------------------------------
# Wrappers
# -----------------------------------------------------------------------------

def prepare_mlp_weights(w_fc, w_proj, compute_dtype=jnp.bfloat16):
    """One-time cast of the MLP weights to the MXU compute dtype.  Call this
    OUTSIDE the hot path (a per-call astype re-reads the f32 weights from HBM
    and writes a fresh low-precision copy on every forward)."""
    return w_fc.astype(compute_dtype), w_proj.astype(compute_dtype)


def mlp_forward(x, w_fc, b_fc, w_proj, b_proj, *, tm=None,
                compute_dtype=jnp.bfloat16, vmem_limit_bytes=None):
    """Fused GPT-2 MLP forward:  gelu_tanh(x @ w_fc + b_fc) @ w_proj + b_proj.

    x:      [B, T, C]
    w_fc:   [C, 4C]   (PyTorch c_fc.weight.T)   -- ideally pre-cast via
    w_proj: [4C, C]   (PyTorch c_proj.weight.T)    prepare_mlp_weights()
    b_fc:   [4C],  b_proj: [C]

    Precision note: with the default compute_dtype=bfloat16 the MXU operands
    (and on v6e/v7x the GELU) run in bf16 with f32 accumulation -- ~0.4%
    relative error vs. the f32 PyTorch module.  Pass compute_dtype=jnp.float32
    for exact-f32 semantics (slower).
    """
    B, T, C = x.shape
    Cin, H = w_fc.shape
    assert Cin == C and w_proj.shape == (H, C) and b_fc.shape == (H,) \
        and b_proj.shape == (C,)
    M = B * T
    out_dtype = x.dtype
    compute_dtype = jnp.dtype(compute_dtype)
    # NOTE: keep C a multiple of 128 in production configs (true for real
    # GPT-2); sub-128 output lane widths fall back to masked partial stores.

    kind = _device_kind()
    cfg = _gen_config(kind)
    gelu_dtype = compute_dtype if cfg["bf16_gelu"] else jnp.dtype(jnp.float32)
    single_buf_ok = _single_buffer_supported()

    if vmem_limit_bytes is None:
        phys = _vmem_capacity_bytes(kind)
        # 64 MiB is fine on the 128-MiB chips (v5e/v6e); on v7x 64 MiB is the
        # entire per-TC VMEM, so cap at ~85% of physical instead.
        vmem_limit_bytes = min(64 * 2 ** 20, int(phys * 0.85))

    tm, th_block, streaming, use_single_buf = _plan(
        M, C, H, cfg, compute_dtype.itemsize, x.dtype.itemsize,
        jnp.dtype(out_dtype).itemsize, vmem_limit_bytes, single_buf_ok, tm)
    num_inner, th_inner = _inner_split(th_block, cfg["max_inner_th"])

    x2d = x.reshape(M, C)                  # bf16 cast happens inside the kernel
    w1 = w_fc if w_fc.dtype == compute_dtype else w_fc.astype(compute_dtype)
    w2 = w_proj if w_proj.dtype == compute_dtype else w_proj.astype(compute_dtype)
    b1 = b_fc.reshape(1, H).astype(gelu_dtype)
    b2 = b_proj.reshape(1, C).astype(jnp.float32)

    num_m = pl.cdiv(M, tm)                 # boundary token block is masked

    def const_spec(shape, index_map):
        # Grid-invariant operand: a single VMEM copy only when it is both
        # needed (double-buffered residency would not fit) and supported.
        if use_single_buf:
            return pl.BlockSpec(shape, index_map,
                                pipeline_mode=pl.Buffered(buffer_count=1))
        return pl.BlockSpec(shape, index_map)

    if not streaming:
        # Weights fully resident in VMEM; 1-D token grid.
        kernel = _make_resident_kernel(num_inner, th_inner, compute_dtype)
        grid_spec = pltpu.PrefetchScalarGridSpec(
            num_scalar_prefetch=0,
            grid=(num_m,),
            in_specs=[
                pl.BlockSpec((tm, C), lambda i: (i, 0)),   # x tile
                const_spec((C, H), lambda i: (0, 0)),      # w_fc  (resident)
                const_spec((1, H), lambda i: (0, 0)),      # b_fc
                const_spec((H, C), lambda i: (0, 0)),      # w_proj (resident)
                const_spec((1, C), lambda i: (0, 0)),      # b_proj
            ],
            out_specs=pl.BlockSpec((tm, C), lambda i: (i, 0)),
        )
        dim_sem = ("parallel",)
    else:
        # Weights streamed over a second ("arbitrary") hidden-dim grid axis;
        # a (tm, C) f32 accumulator lives in scratch across that axis.
        # (On v7x megacore, the parallel token axis is split across the 2 TCs,
        #  so each TC streams its own copy of the weight chunks.)
        num_h = H // th_block
        kernel = _make_streaming_kernel(num_inner, th_inner, compute_dtype)
        grid_spec = pltpu.PrefetchScalarGridSpec(
            num_scalar_prefetch=0,
            grid=(num_m, num_h),
            in_specs=[
                pl.BlockSpec((tm, C), lambda i, h: (i, 0)),        # x (per-i)
                pl.BlockSpec((C, th_block), lambda i, h: (0, h)),  # w_fc chunk
                pl.BlockSpec((1, th_block), lambda i, h: (0, h)),  # b_fc chunk
                pl.BlockSpec((th_block, C), lambda i, h: (h, 0)),  # w_proj chunk
                pl.BlockSpec((1, C), lambda i, h: (0, 0)),         # b_proj
            ],
            out_specs=pl.BlockSpec((tm, C), lambda i, h: (i, 0)),
            scratch_shapes=[pltpu.VMEM((tm, C), jnp.float32)],
        )
        dim_sem = ("parallel", "arbitrary")

    out = pl.pallas_call(
        kernel,
        out_shape=jax.ShapeDtypeStruct((M, C), out_dtype),
        grid_spec=grid_spec,
        compiler_params=pltpu.CompilerParams(
            dimension_semantics=dim_sem,
            vmem_limit_bytes=vmem_limit_bytes,
        ),
    )(x2d, w1, b1, w2, b2)

    return out.reshape(B, T, C)


def mlp_reference(x, w_fc, b_fc, w_proj, b_proj, compute_dtype=None):
    """Pure-JAX reference.  With compute_dtype set, emulates the kernel's
    low-precision path (rounded MXU operands + rounded GELU input/output,
    f32 accumulation) for a tight numerical comparison."""
    f32 = jnp.float32

    def lp(a):
        if compute_dtype is None:
            return a.astype(f32)
        return a.astype(compute_dtype).astype(f32)

    h = jnp.einsum("btc,ch->bth", lp(x), lp(w_fc)) + b_fc.astype(f32)
    g = jax.nn.gelu(lp(h), approximate=True)
    y = jnp.einsum("bth,hc->btc", lp(g), lp(w_proj)) + b_proj.astype(f32)
    return y.astype(x.dtype)


if __name__ == "__main__":
    # Small GPT-2-like config: n_embd=32, hidden=4*32=128, batch=2, seq=8.
    B, T, C = 2, 8, 32
    H = 4 * C

    key = jax.random.PRNGKey(0)
    kx, k1, k2, k3, k4 = jax.random.split(key, 5)

    x = jax.random.normal(kx, (B, T, C), dtype=jnp.float32)
    # Deterministic init mimicking nn.Linear defaults (uniform +-1/sqrt(fan_in)).
    w_fc = jax.random.uniform(k1, (C, H), jnp.float32, -1.0, 1.0) / jnp.sqrt(C)
    b_fc = jax.random.uniform(k2, (H,), jnp.float32, -1.0, 1.0) / jnp.sqrt(C)
    w_proj = jax.random.uniform(k3, (H, C), jnp.float32, -1.0, 1.0) / jnp.sqrt(H)
    b_proj = jax.random.uniform(k4, (C,), jnp.float32, -1.0, 1.0) / jnp.sqrt(H)

    # One-time weight preparation outside the hot path (no per-call recast).
    w_fc_c, w_proj_c = prepare_mlp_weights(w_fc, w_proj)

    y = mlp_forward(x, w_fc_c, b_fc, w_proj_c, b_proj)
    jax.block_until_ready(y)
    assert y.shape == (B, T, C) and y.dtype == x.dtype

    # Tight check: kernel vs a reference applying the same bf16 rounding to
    # the MXU / GELU operands (only accumulation-order / GELU-precision
    # differences remain).
    y_emul = mlp_reference(x, w_fc, b_fc, w_proj, b_proj,
                           compute_dtype=jnp.bfloat16)
    assert jnp.allclose(y, y_emul, atol=2e-2, rtol=2e-2), \
        "mismatch vs bf16-emulating reference"

    # Loose check: original f32 module semantics (bf16 path adds ~0.4%
    # relative rounding noise).
    y_f32 = mlp_reference(x, w_fc, b_fc, w_proj, b_proj)
    assert jnp.allclose(y, y_f32, atol=5e-2, rtol=5e-2), \
        "mismatch vs f32 reference"

    print("KERNEL_OK")
</pallas_src>

<mosaic_0001>
module attributes {stable_mosaic.version = 11 : i64} {
  func.func @kernel(%arg0: i32, %arg1: memref<16x32xf32, #tpu.memory_space<vmem>>, %arg2: memref<32x128xbf16, #tpu.memory_space<vmem>>, %arg3: memref<1x128xbf16, #tpu.memory_space<vmem>>, %arg4: memref<128x32xbf16, #tpu.memory_space<vmem>>, %arg5: memref<1x32xf32, #tpu.memory_space<vmem>>, %arg6: memref<16x32xf32, #tpu.memory_space<vmem>>) attributes {dimension_semantics = [#tpu.dimension_semantics<parallel>], iteration_bounds = array<i64: 1>, scalar_prefetch = 0 : i64, scratch_operands = 0 : i64, tpu.core_type = #tpu.core_type<tc>, window_params = [{transform_indices = @transform_0, window_bounds = array<i64: 16, 32>}, {pipeline_mode = #tpu.pipeline_mode<synchronous>, transform_indices = @transform_1, window_bounds = array<i64: 32, 128>}, {pipeline_mode = #tpu.pipeline_mode<synchronous>, transform_indices = @transform_2, window_bounds = array<i64: 1, 128>}, {pipeline_mode = #tpu.pipeline_mode<synchronous>, transform_indices = @transform_3, window_bounds = array<i64: 128, 32>}, {pipeline_mode = #tpu.pipeline_mode<synchronous>, transform_indices = @transform_4, window_bounds = array<i64: 1, 32>}, {transform_indices = @transform_5, window_bounds = array<i64: 16, 32>}]} {
    %c0 = arith.constant 0 : index
    %c0_0 = arith.constant 0 : index
    %0 = vector.load %arg1[%c0, %c0_0] : memref<16x32xf32, #tpu.memory_space<vmem>>, vector<16x32xf32>
    %1 = arith.truncf %0 : vector<16x32xf32> to vector<16x32xbf16>
    %c0_1 = arith.constant 0 : index
    %c0_2 = arith.constant 0 : index
    %2 = vector.load %arg2[%c0_1, %c0_2] : memref<32x128xbf16, #tpu.memory_space<vmem>>, vector<32x128xbf16>
    %c0_3 = arith.constant 0 : index
    %c0_4 = arith.constant 0 : index
    %3 = vector.load %arg3[%c0_3, %c0_4] : memref<1x128xbf16, #tpu.memory_space<vmem>>, vector<1x128xbf16>
    %c0_5 = arith.constant 0 : index
    %c0_6 = arith.constant 0 : index
    %4 = vector.load %arg4[%c0_5, %c0_6] : memref<128x32xbf16, #tpu.memory_space<vmem>>, vector<128x32xbf16>
    %cst = arith.constant dense<0.000000e+00> : vector<16x128xf32>
    %5 = tpu.matmul %1, %2, %cst {dimension_numbers = #tpu.dot_dimension_numbers<[1], [0], [0], [1], [0, 0, 1, 1], [], []>} : vector<16x32xbf16>, vector<32x128xbf16>, vector<16x128xf32> -> vector<16x128xf32>
    %6 = arith.truncf %5 : vector<16x128xf32> to vector<16x128xbf16>
    %7 = vector.broadcast %3 : vector<1x128xbf16> to vector<16x128xbf16>
    %8 = arith.addf %6, %7 : vector<16x128xbf16>
    %9 = arith.mulf %8, %8 : vector<16x128xbf16>
    %10 = arith.mulf %8, %9 : vector<16x128xbf16>
    %cst_7 = arith.constant 4.467770e-02 : bf16
    %11 = vector.broadcast %cst_7 : bf16 to vector<16x128xbf16>
    %12 = arith.mulf %11, %10 : vector<16x128xbf16>
    %13 = arith.addf %8, %12 : vector<16x128xbf16>
    %cst_8 = arith.constant 7.968750e-01 : bf16
    %14 = vector.broadcast %cst_8 : bf16 to vector<16x128xbf16>
    %15 = arith.mulf %14, %13 : vector<16x128xbf16>
    %16 = math.tanh %15 : vector<16x128xbf16>
    %cst_9 = arith.constant 1.000000e+00 : bf16
    %17 = vector.broadcast %cst_9 : bf16 to vector<16x128xbf16>
    %18 = arith.addf %17, %16 : vector<16x128xbf16>
    %cst_10 = arith.constant 5.000000e-01 : bf16
    %19 = vector.broadcast %cst_10 : bf16 to vector<16x128xbf16>
    %20 = arith.mulf %19, %18 : vector<16x128xbf16>
    %21 = arith.mulf %8, %20 : vector<16x128xbf16>
    %cst_11 = arith.constant dense<0.000000e+00> : vector<16x32xf32>
    %22 = tpu.matmul %21, %4, %cst_11 {dimension_numbers = #tpu.dot_dimension_numbers<[1], [0], [0], [1], [0, 0, 1, 1], [], []>} : vector<16x128xbf16>, vector<128x32xbf16>, vector<16x32xf32> -> vector<16x32xf32>
    %c0_12 = arith.constant 0 : index
    %c0_13 = arith.constant 0 : index
    %23 = vector.load %arg5[%c0_12, %c0_13] : memref<1x32xf32, #tpu.memory_space<vmem>>, vector<1x32xf32>
    %24 = vector.broadcast %23 : vector<1x32xf32> to vector<16x32xf32>
    %25 = arith.addf %22, %24 : vector<16x32xf32>
    %c0_14 = arith.constant 0 : index
    %c0_15 = arith.constant 0 : index
    %26 = vector.load %arg6[%c0_14, %c0_15] : memref<16x32xf32, #tpu.memory_space<vmem>>, vector<16x32xf32>
    tpu.vector_store %arg6[%c0_14, %c0_15], %25 {strides = array<i32>} : memref<16x32xf32, #tpu.memory_space<vmem>>, vector<16x32xf32>,
    return
  }
  func.func @transform_0(%arg0: i32) -> (i32, i32) {
    %c0_i32 = arith.constant 0 : i32
    %c0_i32_0 = arith.constant 0 : i32
    return %arg0, %c0_i32 : i32, i32
  }
  func.func @transform_1(%arg0: i32) -> (i32, i32) {
    %c0_i32 = arith.constant 0 : i32
    %c0_i32_0 = arith.constant 0 : i32
    %c0_i32_1 = arith.constant 0 : i32
    return %c0_i32, %c0_i32_0 : i32, i32
  }
  func.func @transform_2(%arg0: i32) -> (i32, i32) {
    %c0_i32 = arith.constant 0 : i32
    %c0_i32_0 = arith.constant 0 : i32
    %c0_i32_1 = arith.constant 0 : i32
    return %c0_i32, %c0_i32_0 : i32, i32
  }
  func.func @transform_3(%arg0: i32) -> (i32, i32) {
    %c0_i32 = arith.constant 0 : i32
    %c0_i32_0 = arith.constant 0 : i32
    %c0_i32_1 = arith.constant 0 : i32
    return %c0_i32, %c0_i32_0 : i32, i32
  }
  func.func @transform_4(%arg0: i32) -> (i32, i32) {
    %c0_i32 = arith.constant 0 : i32
    %c0_i32_0 = arith.constant 0 : i32
    %c0_i32_1 = arith.constant 0 : i32
    return %c0_i32, %c0_i32_0 : i32, i32
  }
  func.func @transform_5(%arg0: i32) -> (i32, i32) {
    %c0_i32 = arith.constant 0 : i32
    %c0_i32_0 = arith.constant 0 : i32
    return %arg0, %c0_i32 : i32, i32
  }
}

</mosaic_0001>

<bundles_post_ra>
// kernel: tpu_custom_call.1
= control target key start
LH: loop header
LB: loop body
LE: loop exit
PB: predicated region body
PF: predicated region fallthrough
CT: control target
= control target key end

     0   :  { %s401_s0 = inlined_call_operand.vmem [shape: f32[16,32], index: 0, kind: input, shape index: {}]   ;;  %s402_s1 = inlined_call_operand.vmem [shape: bf16[32,128], index: 1, kind: input, shape index: {}]   ;;  %s403_s2 = inlined_call_operand.vmem [shape: bf16[1,128], index: 2, kind: input, shape index: {}]   ;;  %s404_s3 = inlined_call_operand.vmem [shape: bf16[128,32], index: 3, kind: input, shape index: {}]   ;;  %s405_s4 = inlined_call_operand.vmem [shape: f32[1,32], index: 4, kind: input, shape index: {}]   ;;  %s406_s5 = inlined_call_operand.hbm [shape: f32[16,32], index: 5, kind: output, shape index: {}]  }
   0x1   :  { %v270_v0 = vld [vmem:[%s402_s1 + $0x8] sm:$0xff]  ;;  %v269_v1 = vld [vmem:[%s402_s1] sm:$0xff] }
   0x2   :  { %68 = vmatpush.bf16.msra.mxu0 %v270_v0  ;;  %v22_v2 = vld [vmem:[%s401_s0] sm:$0xff]  ;;  %v23_v3 = vld [vmem:[%s401_s0 + $0x8] sm:$0xff] }
   0x3   :  { %10 = vsyncpa [#allocation3], 0  ;;  %v24_v4 = vpack.c.bf16 %v23_v3, %v22_v2  ;;  %vm58_vm0 = vcmask 261120   ;;  %v29_v5 = vld [vmem:[%s403_s2] sm:$0x1]  ;;  %v278_v17 = vld [vmem:[%s404_s3 + $0x38] sm:$0xff] }
   0x4   :  { %v79_v6 = vpack.i.b16 %v29_v5, %v29_v5  ;;  %194 = vmatpush.bf16.msra.mxu1 %v278_v17  ;;  %v277_v20 = vld [vmem:[%s404_s3 + $0x30] sm:$0xff]  ;;  %v276_v25 = vld [vmem:[%s404_s3 + $0x28] sm:$0xff]  ;;  %v275_v30 = vld [vmem:[%s404_s3 + $0x20] sm:$0xff]  ;;  %s313_s17 = smov [#allocation2]   ;;  %s216_s21 = sshll.u32 %s406_s5, 4  ;;  %s217_s21 = int_to_ptr.hbm [resolvable:$true] %s216_s21 }
   0x5   :  { %v274_v35 = vld [vmem:[%s404_s3 + $0x18] sm:$0xff]  ;;  %v273_v40 = vld [vmem:[%s404_s3 + $0x10] sm:$0xff]  ;;  %v272_v45 = vld [vmem:[%s404_s3 + $0x8] sm:$0xff]  ;;  %s214_s18 = sshll.u32 %s313_s17, 4  ;;  %s314_s22 = smov 128   ;;  %s215_s18 = int_to_ptr.vmem [resolvable:$true] %s214_s18 }
   0x6   :  { %69 = vmatpush.bf16.msra.mxu0 %v269_v1  ;;  %v81_v7 = vperm.slane %v79_v6, 0  ;;  %v271_v49 = vld [vmem:[%s404_s3] sm:$0xff]  ;;  %s315_s23 = smov 8  }
   0x7   :  { %v282_v17 = vld [vmem:[%s405_s4] ss:$0 sm:$0xff] }
   0x8   :  { %v84_v10 = vunpack.c.l.bf16 %v81_v7  ;;  %195 = vmatpush.bf16.msra.mxu1 %v277_v20 }
   0x9   :  { %236 = vmatmul.msk.bf16.vlgmr.msra.gmra.mxu0 %vm58_vm0, %v24_v4 }
   0xc   :  { %196 = vmatpush.bf16.msra.mxu1 %v276_v25 }
  0x10   :  { %197 = vmatpush.bf16.msra.mxu1 %v275_v30 }
  0x14   :  { %198 = vmatpush.bf16.msra.mxu1 %v274_v35 }
  0x18   :  { %199 = vmatpush.bf16.msra.mxu1 %v273_v40 }
  0x1c   :  { %200 = vmatpush.bf16.msra.mxu1 %v272_v45 }
  0x20   :  { %201 = vmatpush.bf16.msra.mxu1 %v271_v49 }
  0x86   :  { %v71_v8 = vpop.f32.mrf.mxu0 }
  0x87   :  { %v76_v9 = vpack.c.bf16 %v71_v8, %v71_v8 }
  0x89   :  { %v82_v11 = vunpack.c.l.bf16 %v76_v9 }
  0x8b   :  { %v85_v12 = vadd.f32 %v84_v10, %v82_v11 }
  0x8d   :  { %v87_v13 = vpack.c.bf16 %v85_v12, %v85_v12 }
  0x8e   :  { %v73_v14 = vpop.f32.mrf.mxu0 }
  0x8f   :  { %v362_v15 = vunpack.c.l.bf16 %v87_v13  ;;  %v77_v16 = vpack.c.bf16 %v73_v14, %v73_v14 }
  0x91   :  { %v91_v18 = vmul.f32 %v362_v15, %v362_v15  ;;  %v83_v19 = vunpack.c.l.bf16 %v77_v16 }
  0x93   :  { %v93_v21 = vpack.c.bf16 %v91_v18, %v91_v18  ;;  %v86_v22 = vadd.f32 %v84_v10, %v83_v19 }
  0x95   :  { %v95_v23 = vunpack.c.l.bf16 %v93_v21  ;;  %v88_v24 = vpack.c.bf16 %v86_v22, %v86_v22 }
  0x97   :  { %v97_v26 = vmul.f32 %v95_v23, %v362_v15  ;;  %v90_v27 = vunpack.c.l.bf16 %v88_v24 }
  0x99   :  { %v99_v28 = vpack.c.bf16 %v97_v26, %v97_v26  ;;  %v92_v29 = vmul.f32 %v90_v27, %v90_v27 }
  0x9b   :  { %v101_v31 = vunpack.c.l.bf16 %v99_v28  ;;  %v94_v32 = vpack.c.bf16 %v92_v29, %v92_v29 }
  0x9d   :  { %v103_v33 = vmul.f32 0.044677734, %v101_v31  ;;  %v96_v34 = vunpack.c.l.bf16 %v94_v32 }
  0x9f   :  { %v105_v36 = vpack.c.bf16 %v103_v33, %v103_v33  ;;  %v98_v37 = vmul.f32 %v96_v34, %v90_v27 }
  0xa1   :  { %v107_v38 = vunpack.c.l.bf16 %v105_v36  ;;  %v100_v39 = vpack.c.bf16 %v98_v37, %v98_v37 }
  0xa3   :  { %v109_v41 = vadd.f32 %v107_v38, %v362_v15  ;;  %v102_v42 = vunpack.c.l.bf16 %v100_v39 }
  0xa5   :  { %v111_v43 = vpack.c.bf16 %v109_v41, %v109_v41  ;;  %v104_v44 = vmul.f32 0.044677734, %v102_v42 }
  0xa7   :  { %v106_v46 = vpack.c.bf16 %v104_v44, %v104_v44  ;;  %v113_v47 = vunpack.c.l.bf16 %v111_v43 }
  0xa9   :  { %v108_v48 = vunpack.c.l.bf16 %v106_v46  ;;  %v115_v50 = vmul.f32 0.796875, %v113_v47 }
  0xab   :  { %v110_v51 = vadd.f32 %v108_v48, %v90_v27  ;;  %v117_v52 = vpack.c.bf16 %v115_v50, %v115_v50 }
  0xad   :  { %v112_v53 = vpack.c.bf16 %v110_v51, %v110_v51  ;;  %v119_v54 = vunpack.c.l.bf16 %v117_v52 }
  0xaf   :  { %v114_v55 = vunpack.c.l.bf16 %v112_v53  ;;  %283 = vtanh.f32 %v119_v54 }
  0xb1   :  { %v116_v56 = vmul.f32 0.796875, %v114_v55 }
  0xb3   :  { %v118_v57 = vpack.c.bf16 %v116_v56, %v116_v56 }
  0xb5   :  { %v284_v58 = vpop.eup %283  ;;  %v120_v59 = vunpack.c.l.bf16 %v118_v57 }
  0xb6   :  { %v123_v60 = vpack.c.bf16 %v284_v58, %v284_v58 }
  0xb7   :  { %285 = vtanh.f32 %v120_v59 }
  0xb8   :  { %v125_v61 = vunpack.c.l.bf16 %v123_v60 }
  0xba   :  { %v127_v62 = vadd.f32 1.0, %v125_v61 }
  0xbc   :  { %v129_v63 = vpack.c.bf16 %v127_v62, %v127_v62 }
  0xbd   :  { %v286_v0 = vpop.eup %285 }
  0xbe   :  { %v124_v1 = vpack.c.bf16 %v286_v0, %v286_v0  ;;  %v131_v2 = vunpack.c.l.bf16 %v129_v63 }
  0xc0   :  { %v126_v3 = vunpack.c.l.bf16 %v124_v1  ;;  %v133_v5 = vmul.f32 0.5, %v131_v2 }
  0xc2   :  { %v128_v4 = vadd.f32 1.0, %v126_v3  ;;  %v135_v8 = vpack.c.bf16 %v133_v5, %v133_v5 }
  0xc4   :  { %v130_v6 = vpack.c.bf16 %v128_v4, %v128_v4  ;;  %v137_v11 = vunpack.c.l.bf16 %v135_v8 }
  0xc6   :  { %v132_v7 = vunpack.c.l.bf16 %v130_v6  ;;  %v139_v13 = vmul.f32 %v137_v11, %v362_v15 }
  0xc8   :  { %v134_v9 = vmul.f32 0.5, %v132_v7 }
  0xca   :  { %v136_v10 = vpack.c.bf16 %v134_v9, %v134_v9 }
  0xcc   :  { %v138_v12 = vunpack.c.l.bf16 %v136_v10 }
  0xce   :  { %v140_v14 = vmul.f32 %v138_v12, %v90_v27 }
  0xd0   :  { %v141_v16 = vpack.c.bf16 %v140_v14, %v139_v13 }
  0xd2   :  { %202 = vmatmul.bf16.vlgmr.msra.gmra.mxu1 %v141_v16 }
 0x14f   :  { %v203_v18 = vpop.f32.mrf.mxu1 }
 0x150   :  { %v204_v19 = vadd.f32 %v282_v17, %v203_v18 }
 0x152   :  { %208 = vst.msk [vmem:[#allocation2] sm:$0xff] %vm58_vm0, %v204_v19 }
 0x157   :  { %v205_v20 = vpop.f32.mrf.mxu1 }
 0x158   :  { %v206_v15 = vadd.f32 %v282_v17, %v205_v20 }
 0x15a   :  { %209 = vst.msk [vmem:[#allocation2 + $0x8] sm:$0xff] %vm58_vm0, %v206_v15 }
 0x15b   :  { %222 = dma.vmem_to_hbm [thread:$0]  %s215_s18, 256, %s217_s21, [#allocation3], %s314_s22, %s314_s22, %s315_s23  }
 0x15c   :  { %311 = dma.done.wait [#allocation3], 256  }
 0x15d   :  { %312 = vsyncadd [#allocation3], 4294967040 }
 0x15e   :  { %227 = vsyncpa [#allocation3], 1 }

</bundles_post_ra>
